<compile_context>
chip_gen: v7x
topology: tpu7x:2x2x1
jax: 0.10.0
libtpu: 0.0.40
codegen_flags: <defaults>
</compile_context>

<pallas_src>
import functools
import math

import jax
import jax.numpy as jnp
from jax import lax
from jax.experimental import pallas as pl
from jax.experimental.pallas import tpu as pltpu


def _round_up(v, m):
    return -(-v // m) * m


def _fixed_conv_kernel(tap_ref, x_ref, o_ref, *, H, W, KH, KW, pad):
    """Shared-weight KHxKW conv over TN flattened planes.

    tap_ref : VMEM f32[KH*KW + 1, H*W] -- per-tap weight vectors with the
              column-validity masks pre-folded in; last row is the bias.
    x_ref   : VMEM [TN, H*W]  input planes (flattened row-major, plane-major).
    o_ref   : VMEM [TN, H*W]  output planes.
    """
    HW = H * W
    P = pad * (W + 1)                       # flat halo: rows +-pad and cols +-pad
    Zw = _round_up(max(P, 1), 128) if pad > 0 else 0

    x = x_ref[...].astype(jnp.float32)      # (TN, HW)

    if pad > 0:
        # Build the zero-padded slab in registers.  The zero blocks are a
        # multiple of 128 lanes wide, so the concatenate is lane-tile aligned
        # (pure vreg placement, no shifts).
        z = jnp.zeros((x.shape[0], Zw), jnp.float32)
        xp = jnp.concatenate([z, x, z], axis=1)   # (TN, HW + 2*Zw)
        base = Zw - P
    else:
        xp = x
        base = 0

    # out[n, i*W + j] = bias + sum_{kh,kw} w[kh,kw] * X[n, i+kh-pad, j+kw-pad]
    # With the flat zero padding above, the (kh, kw) tap operand is the
    # length-HW slice of xp at offset base + kh*W + kw; positions where the
    # column shift wraps across rows are zeroed by the pre-masked tap vectors.
    acc = None
    for kh in range(KH):
        for kw in range(KW):
            off = base + kh * W + kw
            t = kh * KW + kw
            term = xp[:, off:off + HW] * tap_ref[t:t + 1, :]
            acc = term if acc is None else acc + term
    acc = acc + tap_ref[KH * KW:KH * KW + 1, :]   # bias row
    o_ref[...] = acc.astype(o_ref.dtype)


def _build_tap_vectors(weight, bias, *, H, W, KH, KW, pad):
    """(KH*KW+1, H*W) f32: masked per-tap weight rows + a bias row."""
    HW = H * W
    col = jnp.tile(jnp.arange(W, dtype=jnp.int32), H)      # j index of flat pos
    w = weight.reshape(KH, KW).astype(jnp.float32)
    rows = []
    for kh in range(KH):
        for kw in range(KW):
            dw = kw - pad
            valid = jnp.logical_and(col + dw >= 0, col + dw < W)
            rows.append(jnp.where(valid, w[kh, kw], jnp.float32(0.0)))
    rows.append(jnp.broadcast_to(bias.astype(jnp.float32).reshape(1,), (HW,)))
    return jnp.stack(rows, axis=0)


def fixed_conv(x, weight, bias, *, kernel_size, padding, stride=1):
    """Pallas implementation of FixedConv.forward.

    x      : [B, C, H, W] (f32 or bf16)
    weight : f32[1, 1, KH, KW]
    bias   : f32[1]
    """
    assert stride == 1, "FixedConv reshape-back requires stride=1"
    assert 2 * padding == kernel_size - 1, (
        "FixedConv reshape-back requires a shape-preserving conv "
        "(stride=1, 2*padding == kernel_size-1)")

    B, C, H, W = x.shape
    KH = KW = kernel_size
    pad = padding
    N, HW = B * C, H * W
    P = pad * (W + 1)
    Zw = _round_up(max(P, 1), 128) if pad > 0 else 0

    # Pure reshapes only -- no layout transposes around the pallas_call.
    x2 = x.reshape(N, HW)
    taps = _build_tap_vectors(weight, bias, H=H, W=W, KH=KH, KW=KW, pad=pad)

    # ---- VMEM budgeting ((8,128)-tile-padding aware) & grid sizing ----------
    try:
        vmem_cap = int(getattr(pltpu.get_tpu_info(), "vmem_capacity_bytes",
                               128 * 1024 * 1024))
    except Exception:
        vmem_cap = 64 * 1024 * 1024                       # conservative fallback
    multi_tc = vmem_cap <= 80 * 1024 * 1024               # v7x: 64 MiB, 2 TCs/chip
    vmem_limit = max(32 * 1024 * 1024,
                     min(vmem_cap * 3 // 4, 96 * 1024 * 1024))
    budget = vmem_limit // 2

    item = x.dtype.itemsize
    hw_pad = _round_up(HW, 128)            # lane padding of the in/out blocks
    hwp_pad = hw_pad + 2 * Zw              # width of the in-register padded slab
    # double-buffered in + out blocks, plus the f32 working set (x, padded
    # slab, accumulator) that lives in vregs / spill VMEM.
    per_plane = 4 * hw_pad * item + 4 * (2 * hw_pad + hwp_pad)
    tap_bytes = 2 * (KH * KW + 1) * hw_pad * 4

    if per_plane + tap_bytes > budget:
        # TODO(synk): tile the flattened plane axis (halo = pad*(W+1)) for
        # very large H*W instead of refusing; not needed at these shapes.
        raise NotImplementedError(
            f"FixedConv Pallas kernel: one {H}x{W} plane exceeds the VMEM "
            f"budget of {budget} bytes")

    max_tn = max(8, min((budget - tap_bytes) // per_plane, 512) // 8 * 8)
    min_blocks = 2 if multi_tc else 4      # 2-TC balance vs. DMA/compute overlap
    if N <= max_tn and N <= 8 * min_blocks:
        TN = N                             # tiny N (demo path): single block
    else:
        TN = min(max_tn, max(8, _round_up(-(-N // min_blocks), 8)))
    grid_n = -(-N // TN)
    if multi_tc and grid_n > 1 and grid_n % 2 == 1:
        # Even out the grid so both v7x TensorCores get equal work.
        TN = min(max_tn, max(8, _round_up(-(-N // (grid_n + 1)), 8)))
        grid_n = -(-N // TN)

    kernel = functools.partial(
        _fixed_conv_kernel, H=H, W=W, KH=KH, KW=KW, pad=pad)

    out2 = pl.pallas_call(
        kernel,
        out_shape=jax.ShapeDtypeStruct((N, HW), x.dtype),
        grid=(grid_n,),
        in_specs=[
            pl.BlockSpec((KH * KW + 1, HW), lambda n: (0, 0)),
            pl.BlockSpec((TN, HW), lambda n: (n, 0)),
        ],
        out_specs=pl.BlockSpec((TN, HW), lambda n: (n, 0)),
        compiler_params=pltpu.CompilerParams(
            dimension_semantics=("parallel",),
            vmem_limit_bytes=int(vmem_limit)),
        cost_estimate=pl.CostEstimate(
            flops=2 * KH * KW * N * HW,
            transcendentals=0,
            bytes_accessed=2 * N * HW * item + (KH * KW + 1) * HW * 4),
    )(taps, x2)

    return out2.reshape(B, C, H, W)


def _reference_conv(x, weight, bias, *, padding, stride=1):
    """Pure-JAX reference matching nn.Conv2d on the reshaped input."""
    B, C, H, W = x.shape
    xr = x.reshape(B * C, 1, H, W).astype(jnp.float32)
    y = lax.conv_general_dilated(
        xr, weight.astype(jnp.float32),
        window_strides=(stride, stride),
        padding=((padding, padding), (padding, padding)),
        dimension_numbers=("NCHW", "OIHW", "NCHW"),
    ) + bias.reshape(1, 1, 1, 1)
    return y.reshape(x.shape).astype(x.dtype)


if __name__ == "__main__":
    # Module config: kernel_size=3, padding=1, stride=1 (shape-preserving).
    kernel_size, padding, stride = 3, 1, 1
    B, C, H, W = 2, 4, 16, 16

    key = jax.random.PRNGKey(0)
    kx, kwt, kb = jax.random.split(key, 3)

    # Deterministic Conv2d-style init: U(-1/sqrt(fan_in), 1/sqrt(fan_in)),
    # fan_in = in_channels * KH * KW = 9.
    fan_in = 1 * kernel_size * kernel_size
    bound = 1.0 / math.sqrt(fan_in)
    weight = jax.random.uniform(
        kwt, (1, 1, kernel_size, kernel_size), jnp.float32, -bound, bound)
    bias = jax.random.uniform(kb, (1,), jnp.float32, -bound, bound)

    x = jax.random.normal(kx, (B, C, H, W), jnp.float32)

    out = fixed_conv(x, weight, bias,
                     kernel_size=kernel_size, padding=padding, stride=stride)
    out = jax.block_until_ready(out)

    ref = _reference_conv(x, weight, bias, padding=padding, stride=stride)
    assert out.shape == x.shape
    assert out.dtype == x.dtype
    assert jnp.allclose(out, ref, atol=1e-5, rtol=1e-5), "mismatch vs reference"

    print("KERNEL_OK")
</pallas_src>

<mosaic_0001>
module attributes {stable_mosaic.version = 11 : i64} {
  func.func @_fixed_conv_kernel(%arg0: i32, %arg1: memref<10x256xf32, #tpu.memory_space<vmem>>, %arg2: memref<8x256xf32, #tpu.memory_space<vmem>>, %arg3: memref<8x256xf32, #tpu.memory_space<vmem>>) attributes {dimension_semantics = [#tpu.dimension_semantics<parallel>], iteration_bounds = array<i64: 1>, scalar_prefetch = 0 : i64, scratch_operands = 0 : i64, tpu.core_type = #tpu.core_type<tc>, window_params = [{pipeline_mode = #tpu.pipeline_mode<synchronous>, transform_indices = @transform_0, window_bounds = array<i64: 10, 256>}, {transform_indices = @transform_1, window_bounds = array<i64: 8, 256>}, {transform_indices = @transform_2, window_bounds = array<i64: 8, 256>}]} {
    %c0 = arith.constant 0 : index
    %c0_0 = arith.constant 0 : index
    %0 = vector.load %arg2[%c0, %c0_0] : memref<8x256xf32, #tpu.memory_space<vmem>>, vector<8x256xf32>
    %cst = arith.constant 0.000000e+00 : f32
    %1 = vector.broadcast %cst : f32 to vector<8x128xf32>
    %2 = tpu.concatenate %1, %0, %1 in 1 : vector<8x128xf32>, vector<8x256xf32>, vector<8x128xf32> -> vector<8x512xf32>
    %3 = vector.extract_strided_slice %2 {offsets = [0, 111], sizes = [8, 256], strides = [1, 1]} : vector<8x512xf32> to vector<8x256xf32>
    %c0_1 = arith.constant 0 : index
    %c0_2 = arith.constant 0 : index
    %4 = vector.load %arg1[%c0_1, %c0_2] : memref<10x256xf32, #tpu.memory_space<vmem>>, vector<1x256xf32>
    %5 = vector.broadcast %4 : vector<1x256xf32> to vector<8x256xf32>
    %6 = arith.mulf %3, %5 : vector<8x256xf32>
    %7 = vector.extract_strided_slice %2 {offsets = [0, 112], sizes = [8, 256], strides = [1, 1]} : vector<8x512xf32> to vector<8x256xf32>
    %c1 = arith.constant 1 : index
    %c0_3 = arith.constant 0 : index
    %8 = vector.load %arg1[%c1, %c0_3] : memref<10x256xf32, #tpu.memory_space<vmem>>, vector<1x256xf32>
    %9 = vector.broadcast %8 : vector<1x256xf32> to vector<8x256xf32>
    %10 = arith.mulf %7, %9 : vector<8x256xf32>
    %11 = arith.addf %6, %10 : vector<8x256xf32>
    %12 = vector.extract_strided_slice %2 {offsets = [0, 113], sizes = [8, 256], strides = [1, 1]} : vector<8x512xf32> to vector<8x256xf32>
    %c2 = arith.constant 2 : index
    %c0_4 = arith.constant 0 : index
    %13 = vector.load %arg1[%c2, %c0_4] : memref<10x256xf32, #tpu.memory_space<vmem>>, vector<1x256xf32>
    %14 = vector.broadcast %13 : vector<1x256xf32> to vector<8x256xf32>
    %15 = arith.mulf %12, %14 : vector<8x256xf32>
    %16 = arith.addf %11, %15 : vector<8x256xf32>
    %17 = vector.extract_strided_slice %2 {offsets = [0, 127], sizes = [8, 256], strides = [1, 1]} : vector<8x512xf32> to vector<8x256xf32>
    %c3 = arith.constant 3 : index
    %c0_5 = arith.constant 0 : index
    %18 = vector.load %arg1[%c3, %c0_5] : memref<10x256xf32, #tpu.memory_space<vmem>>, vector<1x256xf32>
    %19 = vector.broadcast %18 : vector<1x256xf32> to vector<8x256xf32>
    %20 = arith.mulf %17, %19 : vector<8x256xf32>
    %21 = arith.addf %16, %20 : vector<8x256xf32>
    %22 = vector.extract_strided_slice %2 {offsets = [0, 128], sizes = [8, 256], strides = [1, 1]} : vector<8x512xf32> to vector<8x256xf32>
    %c4 = arith.constant 4 : index
    %c0_6 = arith.constant 0 : index
    %23 = vector.load %arg1[%c4, %c0_6] : memref<10x256xf32, #tpu.memory_space<vmem>>, vector<1x256xf32>
    %24 = vector.broadcast %23 : vector<1x256xf32> to vector<8x256xf32>
    %25 = arith.mulf %22, %24 : vector<8x256xf32>
    %26 = arith.addf %21, %25 : vector<8x256xf32>
    %27 = vector.extract_strided_slice %2 {offsets = [0, 129], sizes = [8, 256], strides = [1, 1]} : vector<8x512xf32> to vector<8x256xf32>
    %c5 = arith.constant 5 : index
    %c0_7 = arith.constant 0 : index
    %28 = vector.load %arg1[%c5, %c0_7] : memref<10x256xf32, #tpu.memory_space<vmem>>, vector<1x256xf32>
    %29 = vector.broadcast %28 : vector<1x256xf32> to vector<8x256xf32>
    %30 = arith.mulf %27, %29 : vector<8x256xf32>
    %31 = arith.addf %26, %30 : vector<8x256xf32>
    %32 = vector.extract_strided_slice %2 {offsets = [0, 143], sizes = [8, 256], strides = [1, 1]} : vector<8x512xf32> to vector<8x256xf32>
    %c6 = arith.constant 6 : index
    %c0_8 = arith.constant 0 : index
    %33 = vector.load %arg1[%c6, %c0_8] : memref<10x256xf32, #tpu.memory_space<vmem>>, vector<1x256xf32>
    %34 = vector.broadcast %33 : vector<1x256xf32> to vector<8x256xf32>
    %35 = arith.mulf %32, %34 : vector<8x256xf32>
    %36 = arith.addf %31, %35 : vector<8x256xf32>
    %37 = vector.extract_strided_slice %2 {offsets = [0, 144], sizes = [8, 256], strides = [1, 1]} : vector<8x512xf32> to vector<8x256xf32>
    %c7 = arith.constant 7 : index
    %c0_9 = arith.constant 0 : index
    %38 = vector.load %arg1[%c7, %c0_9] : memref<10x256xf32, #tpu.memory_space<vmem>>, vector<1x256xf32>
    %39 = vector.broadcast %38 : vector<1x256xf32> to vector<8x256xf32>
    %40 = arith.mulf %37, %39 : vector<8x256xf32>
    %41 = arith.addf %36, %40 : vector<8x256xf32>
    %42 = vector.extract_strided_slice %2 {offsets = [0, 145], sizes = [8, 256], strides = [1, 1]} : vector<8x512xf32> to vector<8x256xf32>
    %c8 = arith.constant 8 : index
    %c0_10 = arith.constant 0 : index
    %43 = vector.load %arg1[%c8, %c0_10] : memref<10x256xf32, #tpu.memory_space<vmem>>, vector<1x256xf32>
    %44 = vector.broadcast %43 : vector<1x256xf32> to vector<8x256xf32>
    %45 = arith.mulf %42, %44 : vector<8x256xf32>
    %46 = arith.addf %41, %45 : vector<8x256xf32>
    %c9 = arith.constant 9 : index
    %c0_11 = arith.constant 0 : index
    %47 = vector.load %arg1[%c9, %c0_11] : memref<10x256xf32, #tpu.memory_space<vmem>>, vector<1x256xf32>
    %48 = vector.broadcast %47 : vector<1x256xf32> to vector<8x256xf32>
    %49 = arith.addf %46, %48 : vector<8x256xf32>
    %c0_12 = arith.constant 0 : index
    %c0_13 = arith.constant 0 : index
    %50 = vector.load %arg3[%c0_12, %c0_13] : memref<8x256xf32, #tpu.memory_space<vmem>>, vector<8x256xf32>
    tpu.vector_store %arg3[%c0_12, %c0_13], %49 {strides = array<i32>} : memref<8x256xf32, #tpu.memory_space<vmem>>, vector<8x256xf32>,
    return
  }
  func.func @transform_0(%arg0: i32) -> (i32, i32) {
    %c0_i32 = arith.constant 0 : i32
    %c0_i32_0 = arith.constant 0 : i32
    %c0_i32_1 = arith.constant 0 : i32
    return %c0_i32, %c0_i32_0 : i32, i32
  }
  func.func @transform_1(%arg0: i32) -> (i32, i32) {
    %c0_i32 = arith.constant 0 : i32
    %c0_i32_0 = arith.constant 0 : i32
    return %arg0, %c0_i32 : i32, i32
  }
  func.func @transform_2(%arg0: i32) -> (i32, i32) {
    %c0_i32 = arith.constant 0 : i32
    %c0_i32_0 = arith.constant 0 : i32
    return %arg0, %c0_i32 : i32, i32
  }
}

</mosaic_0001>

<bundles_post_ra>
// kernel: tpu_custom_call.1
= control target key start
LH: loop header
LB: loop body
LE: loop exit
PB: predicated region body
PF: predicated region fallthrough
CT: control target
= control target key end

     0   :  { %7 = vsyncpa [#allocation3], 0  ;;  %s679_s0 = inlined_call_operand.hbm [shape: f32[10,256], index: 0, kind: input, shape index: {}]   ;;  %s680_s1 = inlined_call_operand.hbm [shape: f32[8,256], index: 1, kind: input, shape index: {}]   ;;  %s681_s2 = inlined_call_operand.hbm [shape: f32[8,256], index: 2, kind: output, shape index: {}]  }
   0x1   :  { %8 = vsyncpa [#allocation6], 0 }
   0x2   :  { %9 = vsyncpa [#allocation4], 0  ;;  %s517_s9 = smov [#allocation2]   ;;  %s445_s13 = scalar_lea.hbm %s679_s0, 512 }
   0x3   :  { %s15_s10 = sshll.u32 %s517_s9, 4  ;;  %p446_p0 = scmp.ne.s32.totalorder %s679_s0, %s445_s13  ;;  %s16_s10 = int_to_ptr.vmem [resolvable:$true] %s15_s10 }
   0x4   :  { %p449_p1 = scmp.lt.u32.totalorder %s445_s13, %s679_s0 }
   0x6   :  { %p451_p2 = pnand %p449_p1, %p446_p0 }
   0x8   :  { %454 = shalt.err (!%p451_p2)
}
   0x9   :  { %s455_s18 = scalar_lea.vmem %s16_s10, 512  ;;  %p460_p4 = scmp.lt.s32.totalorder %s16_s10, %s16_s10 }
   0xa   :  { %p456_p3 = scmp.ne.s32.totalorder %s16_s10, %s455_s18  ;;  %p461_p5 = scmp.lt.s32.totalorder %s455_s18, %s455_s18 }
   0xc   :  { %p462_p6 = por %p461_p5, %p460_p4 }
   0xe   :  { %p463_p7 = pnand %p462_p6, %p456_p3 }
  0x10   :  { %466 = shalt.err (!%p463_p7)
}
  0x11   :  { %s518_s19 = smov 256   ;;  %s519_s20 = smov 16  }
  0x12   :  { %21 = dma.hbm_to_vmem [thread:$0]  %s679_s0, 512, %s16_s10, [#allocation3], %s518_s19, %s518_s19, %s519_s20  }
  0x13   :  { %s520_s23 = smov [#allocation5]   ;;  %s467_s27 = scalar_lea.hbm %s680_s1, 256 }
  0x14   :  { %s28_s24 = sshll.u32 %s520_s23, 4  ;;  %p468_p8 = scmp.ne.s32.totalorder %s680_s1, %s467_s27  ;;  %s29_s24 = int_to_ptr.vmem [resolvable:$true] %s28_s24 }
  0x15   :  { %p471_p9 = scmp.lt.u32.totalorder %s467_s27, %s680_s1 }
  0x17   :  { %p473_p10 = pnand %p471_p9, %p468_p8 }
  0x19   :  { %476 = shalt.err (!%p473_p10)
}
  0x1a   :  { %s477_s4 = scalar_lea.vmem %s29_s24, 256  ;;  %p482_p12 = scmp.lt.s32.totalorder %s29_s24, %s29_s24 }
  0x1b   :  { %p478_p11 = scmp.ne.s32.totalorder %s29_s24, %s477_s4  ;;  %p483_p13 = scmp.lt.s32.totalorder %s477_s4, %s477_s4 }
  0x1d   :  { %p484_p0 = por %p483_p13, %p482_p12 }
  0x1f   :  { %p485_p1 = pnand %p484_p0, %p478_p11 }
  0x21   :  { %488 = shalt.err (!%p485_p1)
}
  0x22   :  { %31 = dma.hbm_to_vmem [thread:$0]  %s680_s1, 256, %s29_s24, [#allocation6]  }
  0x23   :  { %511 = dma.done.wait [#allocation3], 512  }
  0x24   :  { %512 = vsyncadd [#allocation3], 4294966784 }
  0x25   :  { %513 = dma.done.wait [#allocation6], 256  }
  0x26   :  { %514 = vsyncadd [#allocation6], 4294967040  ;;  %v42_v0 = vlaneseq  ;;  %v104_v4 = vld [vmem:[#allocation2 + $0x2] ss:$8 sm:$0x3]  ;;  %s521_s6 = smov 113  }
  0x27   :  { %v63_v5 = vld [vmem:[#allocation2 + $0x1] ss:$8 sm:$0x3]  ;;  %s522_s1 = smov 112   ;;  %s523_s7 = smov 127   ;;  %vm118_vm0 = vcmask 924672  }
  0x28   :  { %v43_v1 = vshrl.u32 %v42_v0, 7  ;;  %v145_v10 = vld [vmem:[#allocation2 + $0x3] ss:$8 sm:$0x3]  ;;  %s524_s8 = smov 1   ;;  %s525_s9 = smov 15  }
  0x29   :  { %v212_v13 = vld [vmem:[#allocation2 + $0x5] ss:$8 sm:$0x3]  ;;  %v253_v16 = vld [vmem:[#allocation2 + $0x6] ss:$8 sm:$0x3] }
  0x2a   :  { %v574_v2 = vsub.s32 0, %v43_v1  ;;  %v576_v3 = vsub.s32 1, %v43_v1  ;;  %v294_v19 = vld [vmem:[#allocation2 + $0x7] ss:$8 sm:$0x3]  ;;  %s526_s10 = smov 17  }
  0x2b   :  { %v335_v22 = vld [vmem:[#allocation2 + $0x10] ss:$8 sm:$0x3]  ;;  %v40_v25 = vld [vmem:[#allocation2] ss:$8 sm:$0x3] }
  0x2c   :  { %v109_v6 = vrot.slane %v104_v4, %v574_v2  ;;  %v68_v7 = vrot.slane %v63_v5, %v574_v2  ;;  %v113_v8 = vrot.slane %v104_v4, %v576_v3  ;;  %v72_v9 = vrot.slane %v63_v5, %v576_v3  ;;  %v184_v26 = vld [vmem:[#allocation2 + $0x4] ss:$8 sm:$0x3]  ;;  %s527_s11 = smov 111   ;;  %s528_s12 = smov 126  }
  0x2d   :  { %v154_v11 = vrot.slane %v145_v10, %v576_v3  ;;  %v150_v12 = vrot.slane %v145_v10, %v574_v2  ;;  %v221_v14 = vrot.slane %v212_v13, %v576_v3  ;;  %v217_v15 = vrot.slane %v212_v13, %v574_v2  ;;  %v604_v31 = vld [vmem:[#allocation5 + $0x8] sm:$0xff]  ;;  %v606_v32 = vld [vmem:[#allocation5] sm:$0xff]  ;;  %s529_s13 = smov 110   ;;  %s530_s14 = smov 96  }
  0x2e   :  { %114 = vrot.lane.b32.xlu1 %v109_v6, %s521_s6  ;;  %73 = vrot.lane.b32.xlu0 %v68_v7, %s522_s1  ;;  %v262_v17 = vrot.slane %v253_v16, %v576_v3  ;;  %v258_v18 = vrot.slane %v253_v16, %v574_v2  ;;  %v303_v20 = vrot.slane %v294_v19, %v576_v3  ;;  %vm77_vm1 = vcmask 916480   ;;  %s531_s15 = smov 95   ;;  %s532_s16 = smov 94   ;;  %v376_v13 = vld [vmem:[#allocation2 + $0x11] ss:$8 sm:$0x3] }
  0x2f   :  { %v299_v21 = vrot.slane %v294_v19, %v574_v2  ;;  %v340_v23 = vrot.slane %v335_v22, %v574_v2  ;;  %v344_v24 = vrot.slane %v335_v22, %v576_v3  ;;  %v45_v27 = vrot.slane %v40_v25, %v574_v2  ;;  %s533_s17 = smov [#allocation7]  }
  0x30   :  { %v49_v28 = vrot.slane %v40_v25, %v576_v3  ;;  %v193_v29 = vrot.slane %v184_v26, %v576_v3  ;;  %v189_v30 = vrot.slane %v184_v26, %v574_v2  ;;  %vm94_vm2 = vcmask 1039360   ;;  %s418_s18 = sshll.u32 %s533_s17, 4  ;;  %s419_s18 = int_to_ptr.vmem [resolvable:$true] %s418_s18 }
  0x31   :  { %vm226_vm3 = vcmask 7168   ;;  %vm267_vm4 = vcmask 121856   ;;  %vm308_vm5 = vcmask 130048   ;;  %vm349_vm6 = vcmask 138240   ;;  %s489_s19 = scalar_lea.vmem %s419_s18, 256  ;;  %p494_p3 = scmp.lt.s32.totalorder %s419_s18, %s419_s18 }
  0x32   :  { %116 = vrot.lane.b32.xlu1 %v113_v8, %s521_s6  ;;  %75 = vrot.lane.b32.xlu0 %v72_v9, %s522_s1  ;;  %v197_v33 = vmul.f32 %v193_v29, %v604_v31  ;;  %v196_v34 = vmul.f32 %v189_v30, %v606_v32  ;;  %v385_v16 = vrot.slane %v376_v13, %v576_v3  ;;  %vm54_vm7 = vcmask 908288   ;;  %p490_p2 = scmp.ne.s32.totalorder %s419_s18, %s489_s19  ;;  %p495_p4 = scmp.lt.s32.totalorder %s489_s19, %s489_s19 }
  0x33   :  { %vm135_vm8 = vcmask 1031168   ;;  %vm243_vm9 = vcmask 900096   ;;  %vm284_vm10 = vcmask 785408   ;;  %vm325_vm11 = vcmask 777216  }
  0x34   :  { %vm366_vm12 = vcmask 769024   ;;  %p496_p5 = por %p495_p4, %p494_p3 }
  0x36   :  { %157 = vrot.lane.b32.xlu1 %v154_v11, %s523_s7  ;;  %155 = vrot.lane.b32.xlu0 %v150_v12, %s523_s7  ;;  %p497_p6 = pnand %p496_p5, %p490_p2 }
  0x3a   :  { %224 = vrot.lane.b32.xlu1 %v221_v14, %s524_s8  ;;  %222 = vrot.lane.b32.xlu0 %v217_v15, %s524_s8 }
  0x3e   :  { %265 = vrot.lane.b32.xlu1 %v262_v17, %s525_s9  ;;  %263 = vrot.lane.b32.xlu0 %v258_v18, %s525_s9  ;;  %v381_v17 = vrot.slane %v376_v13, %v574_v2 }
  0x42   :  { %306 = vrot.lane.b32.xlu1 %v303_v20, %s519_s20  ;;  %304 = vrot.lane.b32.xlu0 %v299_v21, %s519_s20 }
  0x46   :  { %345 = vrot.lane.b32.xlu0 %v340_v23, %s526_s10  ;;  %347 = vrot.lane.b32.xlu1 %v344_v24, %s526_s10 }
  0x4a   :  { %50 = vrot.lane.b32.xlu0 %v45_v27, %s527_s11  ;;  %52 = vrot.lane.b32.xlu1 %v49_v28, %s527_s11 }
  0x4e   :  { %202 = vrot.lane.b32.xlu0 %v197_v33, %s527_s11  ;;  %200 = vrot.lane.b32.xlu1 %v196_v34, %s527_s11 }
  0xa0   :  { %v115_v35 = vpop.permute.xlu1 %114  ;;  %v74_v36 = vpop.permute.xlu0 %73 }
  0xa1   :  { %v123_v37 = vmul.f32 0.0, %v115_v35  ;;  %v82_v38 = vmul.f32 0.0, %v74_v36 }
  0xa3   :  { %88 = vrot.lane.b32.xlu0 %v82_v38, %s523_s7  ;;  %129 = vrot.lane.b32.xlu1 %v123_v37, %s528_s12 }
  0xa4   :  { %v117_v39 = vpop.permute.xlu1 %116  ;;  %v76_v40 = vpop.permute.xlu0 %75 }
  0xa5   :  { %v125_v41 = vmul.f32 %v117_v39, %v604_v31  ;;  %v84_v42 = vmul.f32 %v76_v40, %v604_v31  ;;  %v119_v61 = vsel %vm118_vm0, %v115_v35, %v117_v39  ;;  %v78_v62 = vsel %vm77_vm1, %v74_v36, %v76_v40 }
  0xa6   :  { %v124_v63 = vmul.f32 %v119_v61, %v606_v32  ;;  %v83_v0 = vmul.f32 %v78_v62, %v606_v32 }
  0xa7   :  { %92 = vrot.lane.b32.xlu0 %v84_v42, %s523_s7  ;;  %133 = vrot.lane.b32.xlu1 %v125_v41, %s528_s12 }
  0xa8   :  { %v158_v43 = vpop.permute.xlu1 %157  ;;  %v156_v44 = vpop.permute.xlu0 %155 }
  0xa9   :  { %v163_v45 = vmul.f32 0.0, %v156_v44  ;;  %v165_v46 = vmul.f32 %v158_v43, %v604_v31  ;;  %v159_v1 = vsel %vm94_vm2, %v156_v44, %v158_v43 }
  0xaa   :  { %v164_v6 = vmul.f32 %v159_v1, %v606_v32 }
  0xab   :  { %169 = vrot.lane.b32.xlu0 %v163_v45, %s522_s1 }
  0xac   :  { %v225_v47 = vpop.permute.xlu1 %224  ;;  %v223_v48 = vpop.permute.xlu0 %222 }
  0xad   :  { %v231_v49 = vmul.f32 %v223_v48, %v606_v32  ;;  %v233_v50 = vmul.f32 0.0, %v225_v47  ;;  %v227_v7 = vsel %vm226_vm3, %v223_v48, %v225_v47 }
  0xae   :  { %v232_v9 = vmul.f32 %v227_v7, %v604_v31 }
  0xaf   :  { %173 = vrot.lane.b32.xlu0 %v165_v46, %s522_s1  ;;  %237 = vrot.lane.b32.xlu1 %v231_v49, %s529_s13 }
  0xb0   :  { %v266_v51 = vpop.permute.xlu1 %265  ;;  %v264_v52 = vpop.permute.xlu0 %263 }
  0xb1   :  { %v272_v53 = vmul.f32 %v264_v52, %v606_v32  ;;  %v274_v54 = vmul.f32 0.0, %v266_v51  ;;  %v268_v8 = vsel %vm267_vm4, %v264_v52, %v266_v51 }
  0xb2   :  { %v273_v10 = vmul.f32 %v268_v8, %v604_v31 }
  0xb3   :  { %278 = vrot.lane.b32.xlu0 %v272_v53, %s530_s14  ;;  %241 = vrot.lane.b32.xlu1 %v233_v50, %s529_s13 }
  0xb4   :  { %v305_v55 = vpop.permute.xlu0 %304  ;;  %v307_v57 = vpop.permute.xlu1 %306 }
  0xb5   :  { %v313_v56 = vmul.f32 %v305_v55, %v606_v32  ;;  %v315_v58 = vmul.f32 0.0, %v307_v57  ;;  %v309_v11 = vsel %vm308_vm5, %v305_v55, %v307_v57 }
  0xb6   :  { %v314_v14 = vmul.f32 %v309_v11, %v604_v31 }
  0xb7   :  { %282 = vrot.lane.b32.xlu0 %v274_v54, %s530_s14  ;;  %319 = vrot.lane.b32.xlu1 %v313_v56, %s531_s15 }
  0xb8   :  { %v346_v59 = vpop.permute.xlu0 %345  ;;  %v348_v4 = vpop.permute.xlu1 %347 }
  0xb9   :  { %v354_v60 = vmul.f32 %v346_v59, %v606_v32  ;;  %v356_v5 = vmul.f32 0.0, %v348_v4  ;;  %v350_v12 = vsel %vm349_vm6, %v346_v59, %v348_v4 }
  0xba   :  { %v355_v15 = vmul.f32 %v350_v12, %v604_v31 }
  0xbb   :  { %360 = vrot.lane.b32.xlu0 %v354_v60, %s532_s16  ;;  %323 = vrot.lane.b32.xlu1 %v315_v58, %s531_s15 }
  0xbc   :  { %v51_v18 = vpop.permute.xlu0 %50  ;;  %v53_v19 = vpop.permute.xlu1 %52 }
  0xbd   :  { %v61_v2 = vmul.f32 %v53_v19, %v604_v31  ;;  %v55_v36 = vsel %vm54_vm7, %v51_v18, %v53_v19  ;;  %v59_v38 = vmul.f32 0.0, %v51_v18 }
  0xbe   :  { %v60_v39 = vmul.f32 %v55_v36, %v606_v32 }
  0xbf   :  { %131 = vrot.lane.b32.xlu0 %v124_v63, %s528_s12  ;;  %90 = vrot.lane.b32.xlu1 %v83_v0, %s523_s7 }
  0xc0   :  { %v203_v20 = vpop.permute.xlu0 %202  ;;  %v201_v21 = vpop.permute.xlu1 %200 }
  0xc1   :  { %v204_v56 = vsel %vm54_vm7, %v201_v21, %v203_v20 }
  0xc3   :  { %364 = vrot.lane.b32.xlu0 %v356_v5, %s532_s16  ;;  %171 = vrot.lane.b32.xlu1 %v164_v6, %s522_s1 }
  0xc7   :  { %239 = vrot.lane.b32.xlu0 %v232_v9, %s529_s13  ;;  %280 = vrot.lane.b32.xlu1 %v273_v10, %s530_s14 }
  0xcb   :  { %321 = vrot.lane.b32.xlu0 %v314_v14, %s531_s15  ;;  %362 = vrot.lane.b32.xlu1 %v355_v15, %s532_s16 }
  0xcf   :  { %388 = vrot.lane.b32.xlu0 %v385_v16, %s527_s11  ;;  %386 = vrot.lane.b32.xlu1 %v381_v17, %s527_s11 }
 0x115   :  { %v89_v22 = vpop.permute.xlu0 %88  ;;  %v130_v23 = vpop.permute.xlu1 %129 }
 0x119   :  { %v93_v24 = vpop.permute.xlu0 %92  ;;  %v134_v25 = vpop.permute.xlu1 %133 }
 0x11a   :  { %v102_v37 = vadd.f32 %v93_v24, %v61_v2 }
 0x11c   :  { %v143_v44 = vadd.f32 %v134_v25, %v102_v37 }
 0x11d   :  { %v170_v26 = vpop.permute.xlu0 %169 }
 0x121   :  { %v174_v27 = vpop.permute.xlu0 %173  ;;  %v238_v28 = vpop.permute.xlu1 %237 }
 0x122   :  { %v182_v48 = vadd.f32 %v174_v27, %v143_v44 }
 0x124   :  { %v210_v57 = vadd.f32 %v203_v20, %v182_v48 }
 0x125   :  { %v279_v29 = vpop.permute.xlu0 %278  ;;  %v242_v30 = vpop.permute.xlu1 %241 }
 0x129   :  { %v283_v3 = vpop.permute.xlu0 %282  ;;  %v320_v33 = vpop.permute.xlu1 %319 }
 0x12d   :  { %v361_v34 = vpop.permute.xlu0 %360  ;;  %v324_v35 = vpop.permute.xlu1 %323 }
 0x131   :  { %v132_v40 = vpop.permute.xlu0 %131  ;;  %v91_v41 = vpop.permute.xlu1 %90 }
 0x132   :  { %v95_v42 = vsel %vm94_vm2, %v89_v22, %v91_v41  ;;  %v96_v43 = vsel %vm94_vm2, %v91_v41, %v93_v24  ;;  %v136_v47 = vsel %vm135_vm8, %v130_v23, %v132_v40  ;;  %v137_v31 = vsel %vm135_vm8, %v132_v40, %v134_v25 }
 0x133   :  { %v100_v45 = vadd.f32 %v95_v42, %v59_v38  ;;  %v101_v46 = vadd.f32 %v96_v43, %v60_v39 }
 0x135   :  { %v365_v49 = vpop.permute.xlu0 %364  ;;  %v141_v50 = vadd.f32 %v136_v47, %v100_v45  ;;  %v172_v51 = vpop.permute.xlu1 %171  ;;  %v142_v52 = vadd.f32 %v137_v31, %v101_v46 }
 0x136   :  { %v175_v53 = vsel %vm77_vm1, %v170_v26, %v172_v51  ;;  %v176_v32 = vsel %vm77_vm1, %v172_v51, %v174_v27 }
 0x137   :  { %v180_v54 = vadd.f32 %v175_v53, %v141_v50  ;;  %v181_v55 = vadd.f32 %v176_v32, %v142_v52 }
 0x139   :  { %v208_v58 = vadd.f32 %v201_v21, %v180_v54  ;;  %v240_v59 = vpop.permute.xlu0 %239  ;;  %v209_v60 = vadd.f32 %v204_v56, %v181_v55  ;;  %v281_v61 = vpop.permute.xlu1 %280 }
 0x13a   :  { %v244_v62 = vsel %vm243_vm9, %v238_v28, %v240_v59  ;;  %v245_v63 = vsel %vm243_vm9, %v240_v59, %v242_v30  ;;  %v285_v5 = vsel %vm284_vm10, %v279_v29, %v281_v61  ;;  %v286_v6 = vsel %vm284_vm10, %v281_v61, %v283_v3 }
 0x13b   :  { %v249_v0 = vadd.f32 %v238_v28, %v208_v58  ;;  %v250_v1 = vadd.f32 %v244_v62, %v209_v60  ;;  %v251_v4 = vadd.f32 %v245_v63, %v210_v57 }
 0x13d   :  { %v291_v7 = vadd.f32 %v285_v5, %v250_v1  ;;  %v292_v8 = vadd.f32 %v286_v6, %v251_v4  ;;  %v322_v9 = vpop.permute.xlu0 %321  ;;  %v363_v10 = vpop.permute.xlu1 %362  ;;  %v290_v11 = vadd.f32 %v279_v29, %v249_v0 }
 0x13e   :  { %v326_v12 = vsel %vm325_vm11, %v320_v33, %v322_v9  ;;  %v327_v13 = vsel %vm325_vm11, %v322_v9, %v324_v35  ;;  %v367_v17 = vsel %vm366_vm12, %v361_v34, %v363_v10  ;;  %v368_v22 = vsel %vm366_vm12, %v363_v10, %v365_v49 }
 0x13f   :  { %v332_v14 = vadd.f32 %v326_v12, %v291_v7  ;;  %v333_v15 = vadd.f32 %v327_v13, %v292_v8  ;;  %v331_v16 = vadd.f32 %v320_v33, %v290_v11 }
 0x141   :  { %v373_v18 = vadd.f32 %v367_v17, %v332_v14  ;;  %v389_v19 = vpop.permute.xlu0 %388  ;;  %v372_v20 = vadd.f32 %v361_v34, %v331_v16  ;;  %v387_v21 = vpop.permute.xlu1 %386  ;;  %v374_v24 = vadd.f32 %v368_v22, %v333_v15 }
 0x142   :  { %v390_v23 = vsel %vm54_vm7, %v387_v21, %v389_v19 }
 0x143   :  { %v394_v25 = vadd.f32 %v387_v21, %v372_v20  ;;  %v395_v26 = vadd.f32 %v390_v23, %v373_v18  ;;  %v396_v27 = vadd.f32 %v389_v19, %v374_v24 }
 0x145   :  { %400 = vrot.lane.b32.xlu1 %v394_v25, %s526_s10  ;;  %402 = vrot.lane.b32.xlu0 %v395_v26, %s526_s10 }
 0x149   :  { %404 = vrot.lane.b32.xlu1 %v396_v27, %s526_s10 }
 0x1b7   :  { %v401_v28 = vpop.permute.xlu1 %400  ;;  %v403_v29 = vpop.permute.xlu0 %402 }
 0x1b8   :  { %v406_v30 = vsel %vm349_vm6, %v401_v28, %v403_v29 }
 0x1b9   :  { %410 = vst [vmem:[#allocation7] sm:$0xff] %v406_v30 }
 0x1bb   :  { %v405_v3 = vpop.permute.xlu1 %404 }
 0x1bc   :  { %v407_v33 = vsel %vm349_vm6, %v403_v29, %v405_v3 }
 0x1bd   :  { %411 = vst [vmem:[#allocation7 + $0x8] sm:$0xff] %v407_v33 }
 0x1be   :  { %500 = shalt.err (!%p497_p6)
}
 0x1bf   :  { %s501_s22 = scalar_lea.hbm %s681_s2, 256 }
 0x1c0   :  { %p502_p7 = scmp.ne.s32.totalorder %s681_s2, %s501_s22  ;;  %p505_p8 = scmp.lt.u32.totalorder %s501_s22, %s681_s2 }
 0x1c2   :  { %p507_p9 = pnand %p505_p8, %p502_p7 }
 0x1c4   :  { %510 = shalt.err (!%p507_p9)
}
 0x1c5   :  { %421 = dma.vmem_to_hbm [thread:$0]  %s419_s18, 256, %s681_s2, [#allocation4]  }
 0x1c6   :  { %515 = dma.done.wait [#allocation4], 256  }
 0x1c7   :  { %516 = vsyncadd [#allocation4], 4294967040 }
 0x1c8   :  { %425 = vsyncpa [#allocation3], 1 }
 0x1c9   :  { %426 = vsyncpa [#allocation6], 1 }
 0x1ca   :  { %427 = vsyncpa [#allocation4], 1 }

</bundles_post_ra>
